<compile_context>
chip_gen: v6e
topology: v6e:2x2x1
jax: 0.10.0
libtpu: 0.0.40
codegen_flags: <defaults>
</compile_context>

<pallas_src>
import jax
import jax.numpy as jnp
from jax.experimental import pallas as pl
from jax.experimental.pallas import tpu as pltpu


_LANE = 128
_TARGET_BLOCK_BYTES = 4 * 1024 * 1024      # ~4 MiB per grid step
_VMEM_LIMIT_BYTES = 32 * 1024 * 1024       # safe on v5e/v6e/v7x


def _make_kernel(act_func: bool, quantize: bool, n_lvs: int):
    if quantize:
        scale = float(n_lvs - 1)
        inv_scale = 1.0 / scale             # precomputed: no per-element divide

    def kernel(x_ref, o_ref):
        x = x_ref[...]
        if act_func:
            # hard-swish: x * clamp(x + 3, 0, 6) * (1/6)
            x = x * (jnp.clip(x + 3.0, 0.0, 6.0) * (1.0 / 6.0))
        if quantize:
            x = jnp.clip(x, 0.0, 1.0)       # hardtanh(x, 0, 1)
            x = jnp.round(x * scale) * inv_scale
        o_ref[...] = x

    return kernel


def q_hswish(x, *, act_func=True, bits=(32,), n_lvs=1):
    """Pallas implementation of Q_HSwish.forward.

    x: float array (e.g. NCHW activations). Returns array of same shape/dtype.
    """
    orig_shape = x.shape
    dtype = x.dtype
    quantize = not (len(bits) == 1 and bits[0] == 32)
    if quantize and n_lvs < 2:
        raise ValueError(
            "Quantization requested (bits != [32]) but n_lvs < 2; "
            "call-site must supply n_lvs >= 2 (as PyTorch initialize() does).")

    total = x.size
    if total == 0:
        return x

    itemsize = jnp.dtype(dtype).itemsize
    sublane = max(8, 32 // itemsize)        # 8 for f32, 16 for bf16, 32 for int8

    # Widest lane-dense column count that divides the flat size (view-only
    # reshape, no extra HBM traffic).
    cols = None
    for c in (1024, 512, 256, 128):
        if total % c == 0:
            cols = c
            break

    flat = x.reshape(-1)
    pad = 0
    if cols is None:
        # Ragged total: pad once up to a lane multiple. This is the only path
        # that pays an extra HBM pass; common activation shapes never hit it.
        cols = _LANE
        rows_up = -(-total // cols)
        pad = rows_up * cols - total
        flat = jnp.pad(flat, (0, pad))
    rows = flat.size // cols
    x2d = flat.reshape(rows, cols)

    # ~4 MiB blocks, second-to-last dim a multiple of the dtype sublane.
    tile_rows = (_TARGET_BLOCK_BYTES // (cols * itemsize)) // sublane * sublane
    tile_rows = max(sublane, tile_rows)
    if tile_rows >= rows:
        # Small tensor: single full-extent block (always a legal block shape).
        tile_rows = rows
        grid = (1,)
    else:
        # Partial last block (if any) is OOB-masked by Pallas.
        grid = (pl.cdiv(rows, tile_rows),)

    kernel = _make_kernel(act_func, quantize, n_lvs)

    out2d = pl.pallas_call(
        kernel,
        out_shape=jax.ShapeDtypeStruct((rows, cols), dtype),
        grid_spec=pltpu.PrefetchScalarGridSpec(
            num_scalar_prefetch=0,
            grid=grid,
            in_specs=[pl.BlockSpec((tile_rows, cols), lambda i: (i, 0))],
            out_specs=pl.BlockSpec((tile_rows, cols), lambda i: (i, 0)),
        ),
        compiler_params=pltpu.CompilerParams(
            dimension_semantics=("parallel",),
            vmem_limit_bytes=_VMEM_LIMIT_BYTES),
    )(x2d)

    out_flat = out2d.reshape(-1)
    if pad:
        out_flat = out_flat[:total]
    return out_flat.reshape(orig_shape)


def q_hswish_ref(x, *, act_func=True, bits=(32,), n_lvs=1):
    """Pure-JAX reference mirroring the PyTorch forward (same fp formulation
    as the kernel for the 1/6 constant)."""
    if act_func:
        x = x * (jnp.clip(x + 3.0, 0.0, 6.0) * (1.0 / 6.0))
    if len(bits) == 1 and bits[0] == 32:
        return x
    x = jnp.clip(x, 0.0, 1.0)
    return jnp.round(x * (n_lvs - 1)) / (n_lvs - 1)


if __name__ == "__main__":
    key = jax.random.PRNGKey(0)

    # Primary small NCHW input, default module config (bits=[32] -> plain h-swish).
    x = jax.random.normal(key, (2, 4, 16, 16), dtype=jnp.float32) * 3.0
    out = jax.block_until_ready(q_hswish(x, act_func=True, bits=(32,), n_lvs=1))
    ref = q_hswish_ref(x, act_func=True, bits=(32,), n_lvs=1)
    assert out.shape == x.shape and out.dtype == x.dtype
    assert jnp.allclose(out, ref, atol=1e-6), "mismatch vs reference (hswish path)"

    # Non-default quantization branch (e.g. after initialize(n_lvs=16), bits=[4]).
    out_q = jax.block_until_ready(q_hswish(x, act_func=True, bits=(4,), n_lvs=16))
    ref_q = q_hswish_ref(x, act_func=True, bits=(4,), n_lvs=16)
    assert jnp.allclose(out_q, ref_q, atol=1e-6), "mismatch vs reference (quant path)"

    # Multi-block grid with a ragged (masked) last block.
    x2 = jax.random.normal(jax.random.PRNGKey(1), (3, 64, 64, 128), dtype=jnp.float32)
    out2 = jax.block_until_ready(q_hswish(x2))
    assert jnp.allclose(out2, q_hswish_ref(x2), atol=1e-6), "mismatch (multi-block)"

    # Odd flat size -> padded fallback path.
    x3 = jax.random.normal(jax.random.PRNGKey(2), (2, 3, 15, 7), dtype=jnp.float32)
    out3 = jax.block_until_ready(q_hswish(x3))
    assert jnp.allclose(out3, q_hswish_ref(x3), atol=1e-6), "mismatch (pad path)"

    # bf16 input exercises the dtype-aware sublane logic.
    xb = (jax.random.normal(jax.random.PRNGKey(3), (2, 4, 16, 16)) * 3.0).astype(jnp.bfloat16)
    outb = jax.block_until_ready(q_hswish(xb))
    refb = q_hswish_ref(xb)
    assert outb.dtype == jnp.bfloat16
    assert jnp.allclose(outb.astype(jnp.float32), refb.astype(jnp.float32), atol=2e-2), \
        "mismatch (bf16 path)"

    print("KERNEL_OK")
</pallas_src>

<mosaic_0001>
module attributes {stable_mosaic.version = 11 : i64} {
  func.func @kernel(%arg0: i32, %arg1: memref<2x1024xf32, #tpu.memory_space<vmem>>, %arg2: memref<2x1024xf32, #tpu.memory_space<vmem>>) attributes {dimension_semantics = [#tpu.dimension_semantics<parallel>], iteration_bounds = array<i64: 1>, scalar_prefetch = 0 : i64, scratch_operands = 0 : i64, tpu.core_type = #tpu.core_type<tc>, window_params = [{transform_indices = @transform_0, window_bounds = array<i64: 2, 1024>}, {transform_indices = @transform_1, window_bounds = array<i64: 2, 1024>}]} {
    %c0 = arith.constant 0 : index
    %c0_0 = arith.constant 0 : index
    %0 = vector.load %arg1[%c0, %c0_0] : memref<2x1024xf32, #tpu.memory_space<vmem>>, vector<2x1024xf32>
    %cst = arith.constant 3.000000e+00 : f32
    %1 = vector.broadcast %cst : f32 to vector<2x1024xf32>
    %2 = arith.addf %0, %1 : vector<2x1024xf32>
    %cst_1 = arith.constant 0.000000e+00 : f32
    %cst_2 = arith.constant 6.000000e+00 : f32
    %3 = vector.broadcast %cst_1 : f32 to vector<2x1024xf32>
    %4 = arith.maximumf %3, %2 : vector<2x1024xf32>
    %5 = vector.broadcast %cst_2 : f32 to vector<2x1024xf32>
    %6 = arith.minimumf %5, %4 : vector<2x1024xf32>
    %cst_3 = arith.constant 0.166666672 : f32
    %7 = vector.broadcast %cst_3 : f32 to vector<2x1024xf32>
    %8 = arith.mulf %6, %7 : vector<2x1024xf32>
    %9 = arith.mulf %0, %8 : vector<2x1024xf32>
    %c0_4 = arith.constant 0 : index
    %c0_5 = arith.constant 0 : index
    %10 = vector.load %arg2[%c0_4, %c0_5] : memref<2x1024xf32, #tpu.memory_space<vmem>>, vector<2x1024xf32>
    tpu.vector_store %arg2[%c0_4, %c0_5], %9 {strides = array<i32>} : memref<2x1024xf32, #tpu.memory_space<vmem>>, vector<2x1024xf32>,
    return
  }
  func.func @transform_0(%arg0: i32) -> (i32, i32) {
    %c0_i32 = arith.constant 0 : i32
    %c0_i32_0 = arith.constant 0 : i32
    return %arg0, %c0_i32 : i32, i32
  }
  func.func @transform_1(%arg0: i32) -> (i32, i32) {
    %c0_i32 = arith.constant 0 : i32
    %c0_i32_0 = arith.constant 0 : i32
    return %arg0, %c0_i32 : i32, i32
  }
}

</mosaic_0001>

<bundles_post_ra>
// kernel: tpu_custom_call.1
= control target key start
LH: loop header
LB: loop body
LE: loop exit
PB: predicated region body
PF: predicated region fallthrough
CT: control target
= control target key end

     0   :  { %6 = vsyncpa [#allocation3], 0  ;;  %s114_s0 = inlined_call_operand.hbm [shape: f32[2,1024], index: 0, kind: input, shape index: {}]   ;;  %s115_s1 = inlined_call_operand.hbm [shape: f32[2,1024], index: 1, kind: output, shape index: {}]  }
   0x1   :  { %7 = vsyncpa [#allocation4], 0  ;;  %s96_s6 = smov [#allocation2]  }
   0x2   :  { %s14_s7 = sshll.u32 %s96_s6, 4  ;;  %s15_s7 = int_to_ptr.vmem [resolvable:$true] %s14_s7 }
   0x3   :  { %s60_s8 = scalar_lea.vmem %s15_s7, 256  ;;  %p65_p1 = scmp.lt.s32.totalorder %s15_s7, %s15_s7 }
   0x4   :  { %p61_p0 = scmp.ne.s32.totalorder %s15_s7, %s60_s8  ;;  %p66_p2 = scmp.lt.s32.totalorder %s60_s8, %s60_s8 }
   0x6   :  { %p67_p3 = por %p66_p2, %p65_p1 }
   0x8   :  { %p68_p4 = pnand %p67_p3, %p61_p0 }
   0xa   :  { %71 = shalt.err (!%p68_p4)
}
   0xb   :  { %17 = dma.hbm_to_vmem [thread:$0]  %s114_s0, 256, %s15_s7, [#allocation3]  }
   0xc   :  { %92 = dma.done.wait [#allocation3], 256  }
   0xd   :  { %93 = vsyncadd [#allocation3], 4294967040  ;;  %v21_v0 = vld [vmem:[#allocation2] sm:$0xff]  ;;  %v22_v1 = vld [vmem:[#allocation2 + $0x8] sm:$0xff]  ;;  %s97_s11 = smov [#allocation5]  }
   0xe   :  { %v23_v2 = vadd.f32 3.0, %v21_v0  ;;  %v24_v3 = vadd.f32 3.0, %v22_v1  ;;  %s41_s12 = sshll.u32 %s97_s11, 4  ;;  %s42_s12 = int_to_ptr.vmem [resolvable:$true] %s41_s12 }
   0xf   :  { %s72_s0 = scalar_lea.vmem %s42_s12, 256  ;;  %p77_p6 = scmp.lt.s32.totalorder %s42_s12, %s42_s12 }
  0x10   :  { %v25_v4 = vmax.f32 %v23_v2, 0.0  ;;  %v26_v5 = vmax.f32 %v24_v3, 0.0  ;;  %p73_p5 = scmp.ne.s32.totalorder %s42_s12, %s72_s0  ;;  %p78_p7 = scmp.lt.s32.totalorder %s72_s0, %s72_s0 }
  0x12   :  { %v27_v6 = vmin.f32 %v25_v4, 6.0  ;;  %v28_v7 = vmin.f32 %v26_v5, 6.0  ;;  %p79_p8 = por %p78_p7, %p77_p6 }
  0x14   :  { %v29_v8 = vmul.f32 0.16666667, %v27_v6  ;;  %v30_v9 = vmul.f32 0.16666667, %v28_v7  ;;  %p80_p9 = pnand %p79_p8, %p73_p5 }
  0x16   :  { %v31_v10 = vmul.f32 %v29_v8, %v21_v0  ;;  %v32_v11 = vmul.f32 %v30_v9, %v22_v1 }
  0x18   :  { %33 = vst [vmem:[#allocation5] sm:$0xff] %v31_v10  ;;  %34 = vst [vmem:[#allocation5 + $0x8] sm:$0xff] %v32_v11 }
  0x19   :  { %83 = shalt.err (!%p80_p9)
}
  0x1a   :  { %44 = dma.vmem_to_hbm [thread:$0]  %s42_s12, 256, %s115_s1, [#allocation4]  }
  0x1b   :  { %94 = dma.done.wait [#allocation4], 256  }
  0x1c   :  { %95 = vsyncadd [#allocation4], 4294967040 }
  0x1d   :  { %48 = vsyncpa [#allocation3], 1 }
  0x1e   :  { %49 = vsyncpa [#allocation4], 1 }

</bundles_post_ra>
